<compile_context>
chip_gen: v6e
topology: v6e:2x2x1
jax: 0.10.0
libtpu: 0.0.40
codegen_flags: <defaults>
</compile_context>

<pallas_src>
import functools

import jax
import jax.numpy as jnp
from jax.experimental import pallas as pl
from jax.experimental.pallas import tpu as pltpu


_MIN_GRID_STEPS = 4                      # pipeline overlap + feed both v7x TCs
_CHUNK_TEMP_BYTES = 2 * 1024 * 1024      # target size of per-chunk f32 temporaries
_TEMP_ALLOWANCE = 3 * _CHUNK_TEMP_BYTES  # upcast + product + slack


def _vmem_capacity_bytes() -> int:
    try:
        cap = getattr(pltpu.get_tpu_info(), "vmem_capacity_bytes", None)
        if cap:
            return int(cap)
    except Exception:
        pass
    return 64 * 1024 * 1024  # conservative default: v7x per-TensorCore VMEM


def _vmem_limit_bytes() -> int:
    cap = _vmem_capacity_bytes()
    if cap <= 64 * 1024 * 1024:          # v7x: 64 MiB physical per TC
        return 32 * 1024 * 1024
    return 48 * 1024 * 1024              # v5e / v6e: 128 MiB physical


def _round_tb(tb: int, B: int) -> int:
    """Batch tile must equal B or be a multiple of 8 (sublane constraint)."""
    if tb >= B:
        return B
    return max(8, (tb // 8) * 8)


def _pick_tiles_m1(B: int, S: int, D: int, x_itemsize: int, mask_itemsize: int):
    vmem_limit = _vmem_limit_bytes()

    # Lane-dense D tile: full D when small, otherwise 512 (multiple of 128).
    td = D if D <= 512 else 512
    d_tiles = pl.cdiv(D, td)

    # Batch tile from a real VMEM model: Pallas double-buffers every block,
    # the output block is f32, and the kernel keeps small f32 chunk temps.
    bytes_per_row = 2 * (S * td * x_itemsize + S * mask_itemsize + td * 4)
    tb = max(1, (vmem_limit - _TEMP_ALLOWANCE) // bytes_per_row)
    tb = _round_tb(tb, B)
    # TODO(synk): if even a TB=8 block of (S, td) overflows the budget (huge
    # S*D), add an inner S-reduction grid axis ('arbitrary', last) with a VMEM
    # f32 accumulator instead of forcing the tile to 8.

    # Guarantee a few grid steps so DMA/compute overlap and both cores work.
    if B > 8 and pl.cdiv(B, tb) * d_tiles < _MIN_GRID_STEPS:
        want_b_tiles = max(1, -(-_MIN_GRID_STEPS // d_tiles))
        cap = max(8, ((-(-B // want_b_tiles) + 7) // 8) * 8)
        if cap < tb:
            tb = cap

    # S-chunk so the in-kernel f32 upcast/product temporaries stay small.
    sc = max(1, _CHUNK_TEMP_BYTES // max(1, tb * td * 4))
    sc = max(8, (sc // 8) * 8)
    sc = min(sc, S)

    return tb, td, d_tiles, sc, vmem_limit


def _pool_kernel_m1(mask_ref, x_ref, out_ref, *, average: bool, s_chunk: int):
    """M == 1 fast path; one (batch tile, D tile) per grid step.

    mask_ref : (TB, S)     native dtype
    x_ref    : (TB, S, TD) native dtype
    out_ref  : (TB, TD)    f32 (lane dense, already 'squeezed')
    """
    tb, S, td = x_ref.shape
    m_full = mask_ref[...].astype(jnp.float32)                     # (TB, S), small
    acc = jnp.zeros((tb, td), jnp.float32)
    # Chunk the S reduction: only a (TB, SC, TD) f32 temporary is ever live.
    start = 0
    while start < S:
        sc = min(s_chunk, S - start)
        m = m_full[:, start:start + sc]                            # (TB, SC)
        xv = x_ref[:, start:start + sc, :].astype(jnp.float32)     # (TB, SC, TD)
        acc = acc + jnp.sum(m[:, :, None] * xv, axis=1)            # VPU masked reduce
        start += sc
    if average:
        denom = jnp.sum(m_full, axis=-1, keepdims=True) + 1e-16    # (TB, 1)
        # Exact divide (keeps parity with the torch reference).
        acc = acc * (1.0 / denom)
    out_ref[...] = acc


def _pool_kernel_general(mask_ref, x_ref, out_ref, *, average: bool):
    """General M > 1 path (rare): batched matmul per batch tile."""
    # TODO(synk): rare path -- could reuse the chunked VPU accumulate per m-row
    # for small M instead of staging both operands in f32 for the MXU.
    m = mask_ref[...].astype(jnp.float32)                          # (TB, M, S)
    xv = x_ref[...].astype(jnp.float32)                            # (TB, S, D)
    s = jnp.einsum("bms,bsd->bmd", m, xv, preferred_element_type=jnp.float32)
    if average:
        denom = jnp.sum(m, axis=-1, keepdims=True) + 1e-16         # (TB, M, 1)
        s = s * (1.0 / denom)
    out_ref[...] = s


def _masked_pool(x: jax.Array, mask: jax.Array, average: bool) -> jax.Array:
    """Pallas implementation of torch.bmm(mask, x.float()).squeeze(1) (+avg)."""
    B, M, S = mask.shape
    Bx, Sx, D = x.shape
    assert B == Bx and S == Sx, "mask/x batch or sequence dims mismatch (same as torch.bmm)"

    # Keep the mask in its narrowest dtype; the kernel casts per chunk.
    if mask.dtype == jnp.bool_:
        mask = mask.astype(jnp.int8)   # same HBM bytes, lowers cleanly

    if M == 1:
        mask2d = jnp.squeeze(mask, axis=1)                         # (B, S)
        tb, td, d_tiles, sc, vmem_limit = _pick_tiles_m1(
            B, S, D, x.dtype.itemsize, mask2d.dtype.itemsize)
        out = pl.pallas_call(
            functools.partial(_pool_kernel_m1, average=average, s_chunk=sc),
            out_shape=jax.ShapeDtypeStruct((B, D), jnp.float32),
            grid_spec=pltpu.PrefetchScalarGridSpec(
                num_scalar_prefetch=0,
                grid=(pl.cdiv(B, tb), d_tiles),
                in_specs=[
                    pl.BlockSpec((tb, S), lambda b, d: (b, 0)),
                    pl.BlockSpec((tb, S, td), lambda b, d: (b, 0, d)),
                ],
                out_specs=pl.BlockSpec((tb, td), lambda b, d: (b, d)),
            ),
            compiler_params=pltpu.CompilerParams(
                dimension_semantics=("parallel", "parallel"),
                vmem_limit_bytes=vmem_limit,
            ),
        )(mask2d, x)
        return out                                                 # (B, D) == squeeze(1)

    # General M > 1 path (torch would return (B, M, D); squeeze(1) is a no-op).
    vmem_limit = _vmem_limit_bytes()
    row_bytes = (2 * (S * D * x.dtype.itemsize
                      + M * S * mask.dtype.itemsize
                      + M * D * 4)
                 + 4 * (S * D + M * S))                            # in-kernel f32 upcasts
    tb = max(1, (vmem_limit - _TEMP_ALLOWANCE) // row_bytes)
    tb = _round_tb(tb, B)
    if B > 8 and pl.cdiv(B, tb) < _MIN_GRID_STEPS:
        cap = max(8, ((-(-B // _MIN_GRID_STEPS) + 7) // 8) * 8)
        if cap < tb:
            tb = cap
    out = pl.pallas_call(
        functools.partial(_pool_kernel_general, average=average),
        out_shape=jax.ShapeDtypeStruct((B, M, D), jnp.float32),
        grid_spec=pltpu.PrefetchScalarGridSpec(
            num_scalar_prefetch=0,
            grid=(pl.cdiv(B, tb),),
            in_specs=[
                pl.BlockSpec((tb, M, S), lambda b: (b, 0, 0)),
                pl.BlockSpec((tb, S, D), lambda b: (b, 0, 0)),
            ],
            out_specs=pl.BlockSpec((tb, M, D), lambda b: (b, 0, 0)),
        ),
        compiler_params=pltpu.CompilerParams(
            dimension_semantics=("parallel",),
            vmem_limit_bytes=vmem_limit,
        ),
    )(mask, x)
    return out


class PoolingLayer:
    """JAX/Pallas port of the PyTorch PoolingLayer forward pass."""

    def __init__(self, pooling_type: str = "concat"):
        self.pooling_type = pooling_type

    def __call__(self, x: jax.Array, mask=None) -> jax.Array:
        if self.pooling_type == "concat":
            return x
        elif self.pooling_type in ("average", "sum"):
            if mask is None:
                # Matches torch: mask = (x != 0).float().  Only well-formed for
                # bmm when S == D, exactly like the original module.
                # TODO(synk): the reference's mask=None path is shape-inconsistent
                # for general S != D; reproduced as-is.
                mask = (x != 0).astype(jnp.float32)
            return _masked_pool(x, mask, average=(self.pooling_type == "average"))
        else:
            raise ValueError(
                "Invalid pooling type. Supported types: 'concat', 'average', 'sum'"
            )


def _reference(x, mask, pooling_type):
    """Pure-JAX reference (M == 1, exact f32 VPU products) for verification."""
    if pooling_type == "concat":
        return x
    m = mask.astype(jnp.float32)                                   # (B, 1, S)
    xf = x.astype(jnp.float32)                                     # (B, S, D)
    s = jnp.sum(m[:, 0, :, None] * xf, axis=1)                     # (B, D)
    if pooling_type == "sum":
        return s
    denom = jnp.sum(m, axis=-1) + 1e-16                            # (B, 1)
    return s / denom


if __name__ == "__main__":
    key = jax.random.PRNGKey(0)

    def check(B, S, D, dtype, tol):
        kx, km = jax.random.split(jax.random.fold_in(key, B * 1000 + S * 10 + D))
        x = jax.random.normal(kx, (B, S, D), dtype=jnp.float32).astype(dtype)
        # mask: (B, 1, S) of 0/1 floats, with some padded positions.
        mask = (jax.random.uniform(km, (B, 1, S)) > 0.3).astype(jnp.float32)
        mask = mask.at[:, :, 0].set(1.0)   # at least one valid position per row
        good = True
        for ptype in ("concat", "sum", "average"):
            layer = PoolingLayer(ptype)
            out = layer(x) if ptype == "concat" else layer(x, mask)
            out = jax.block_until_ready(out)
            ref = _reference(x, mask, ptype)
            if out.shape != ref.shape:
                good = False
                continue
            if not jnp.allclose(out.astype(jnp.float32), ref.astype(jnp.float32),
                                atol=tol, rtol=tol):
                good = False
        return good

    ok = True
    # Tiny shapes (single grid step), both dtypes.
    for dtype, tol in ((jnp.float32, 1e-5), (jnp.bfloat16, 2e-2)):
        ok &= check(2, 8, 32, dtype, tol)
    # Modest shape that exercises multi-step grid + partial final batch tile.
    ok &= check(20, 64, 256, jnp.float32, 1e-4)

    if ok:
        print("KERNEL_OK")
</pallas_src>

<mosaic_0001>
module attributes {stable_mosaic.version = 11 : i64} {
  func.func @_pool_kernel_m1(%arg0: i32, %arg1: i32, %arg2: memref<2x8xf32, #tpu.memory_space<vmem>>, %arg3: memref<2x8x32xf32, #tpu.memory_space<vmem>>, %arg4: memref<2x32xf32, #tpu.memory_space<vmem>>) attributes {dimension_semantics = [#tpu.dimension_semantics<parallel>, #tpu.dimension_semantics<parallel>], iteration_bounds = array<i64: 1, 1>, scalar_prefetch = 0 : i64, scratch_operands = 0 : i64, tpu.core_type = #tpu.core_type<tc>, window_params = [{transform_indices = @transform_0, window_bounds = array<i64: 2, 8>}, {transform_indices = @transform_1, window_bounds = array<i64: 2, 8, 32>}, {transform_indices = @transform_2, window_bounds = array<i64: 2, 32>}]} {
    %c0 = arith.constant 0 : index
    %c0_0 = arith.constant 0 : index
    %0 = vector.load %arg2[%c0, %c0_0] : memref<2x8xf32, #tpu.memory_space<vmem>>, vector<2x8xf32>
    %cst = arith.constant 0.000000e+00 : f32
    %1 = vector.broadcast %cst : f32 to vector<2x32xf32>
    %c0_1 = arith.constant 0 : index
    %c0_2 = arith.constant 0 : index
    %c0_3 = arith.constant 0 : index
    %2 = vector.load %arg3[%c0_1, %c0_2, %c0_3] : memref<2x8x32xf32, #tpu.memory_space<vmem>>, vector<2x8x32xf32>
    %3 = vector.shape_cast %0 : vector<2x8xf32> to vector<2x8x1xf32>
    %4 = vector.broadcast %3 : vector<2x8x1xf32> to vector<2x8x32xf32>
    %5 = arith.mulf %4, %2 : vector<2x8x32xf32>
    %cst_4 = arith.constant dense<0.000000e+00> : vector<2x32xf32>
    %6 = vector.multi_reduction <add>, %5, %cst_4 [1] : vector<2x8x32xf32> to vector<2x32xf32>
    %7 = arith.addf %1, %6 : vector<2x32xf32>
    %c0_5 = arith.constant 0 : index
    %c0_6 = arith.constant 0 : index
    %8 = vector.load %arg4[%c0_5, %c0_6] : memref<2x32xf32, #tpu.memory_space<vmem>>, vector<2x32xf32>
    tpu.vector_store %arg4[%c0_5, %c0_6], %7 {strides = array<i32>} : memref<2x32xf32, #tpu.memory_space<vmem>>, vector<2x32xf32>,
    return
  }
  func.func @transform_0(%arg0: i32, %arg1: i32) -> (i32, i32) {
    %c0_i32 = arith.constant 0 : i32
    %c0_i32_0 = arith.constant 0 : i32
    return %arg0, %c0_i32 : i32, i32
  }
  func.func @transform_1(%arg0: i32, %arg1: i32) -> (i32, i32, i32) {
    %c0_i32 = arith.constant 0 : i32
    %c0_i32_0 = arith.constant 0 : i32
    return %arg0, %c0_i32, %arg1 : i32, i32, i32
  }
  func.func @transform_2(%arg0: i32, %arg1: i32) -> (i32, i32) {
    %c0_i32 = arith.constant 0 : i32
    return %arg0, %arg1 : i32, i32
  }
}

</mosaic_0001>

<bundles_post_ra>
// kernel: tpu_custom_call.1
= control target key start
LH: loop header
LB: loop body
LE: loop exit
PB: predicated region body
PF: predicated region fallthrough
CT: control target
= control target key end

     0   :  { %7 = vsyncpa [#allocation3], 0  ;;  %s197_s0 = inlined_call_operand.hbm [shape: f32[2,8], index: 0, kind: input, shape index: {}]   ;;  %s198_s1 = inlined_call_operand.hbm [shape: f32[2,8,32], index: 1, kind: input, shape index: {}]   ;;  %s199_s2 = inlined_call_operand.hbm [shape: f32[2,32], index: 2, kind: output, shape index: {}]  }
   0x1   :  { %8 = vsyncpa [#allocation6], 0 }
   0x2   :  { %9 = vsyncpa [#allocation4], 0  ;;  %s168_s9 = smov [#allocation2]   ;;  %s169_s11 = smov [#allocation5]  }
   0x3   :  { %s16_s10 = sshll.u32 %s168_s9, 4  ;;  %s25_s12 = sshll.u32 %s169_s11, 4  ;;  %s17_s10 = int_to_ptr.vmem [resolvable:$true] %s16_s10  ;;  %s26_s12 = int_to_ptr.vmem [resolvable:$true] %s25_s12 }
   0x4   :  { %s110_s13 = scalar_lea.vmem %s17_s10, 32  ;;  %p115_p1 = scmp.lt.s32.totalorder %s17_s10, %s17_s10 }
   0x5   :  { %p111_p0 = scmp.ne.s32.totalorder %s17_s10, %s110_s13  ;;  %p116_p2 = scmp.lt.s32.totalorder %s110_s13, %s110_s13 }
   0x7   :  { %p117_p3 = por %p116_p2, %p115_p1 }
   0x9   :  { %p118_p4 = pnand %p117_p3, %p111_p0 }
   0xb   :  { %121 = shalt.err (!%p118_p4)
}
   0xc   :  { %19 = dma.hbm_to_vmem [thread:$0]  %s197_s0, 32, %s17_s10, [#allocation3]  }
   0xd   :  { %s130_s16 = scalar_lea.vmem %s26_s12, 256  ;;  %p135_p6 = scmp.lt.s32.totalorder %s26_s12, %s26_s12 }
   0xe   :  { %p131_p5 = scmp.ne.s32.totalorder %s26_s12, %s130_s16  ;;  %p136_p7 = scmp.lt.s32.totalorder %s130_s16, %s130_s16 }
  0x10   :  { %p137_p8 = por %p136_p7, %p135_p6 }
  0x12   :  { %p138_p9 = pnand %p137_p8, %p131_p5 }
  0x14   :  { %141 = shalt.err (!%p138_p9)
}
  0x15   :  { %s170_s17 = smov 128   ;;  %s171_s18 = smov 8  }
  0x16   :  { %31 = dma.hbm_to_vmem [thread:$0]  %s198_s1, 256, %s26_s12, [#allocation6], %s170_s17, %s170_s17, %s171_s18  }
  0x17   :  { %162 = dma.done.wait [#allocation3], 32  }
  0x18   :  { %163 = vsyncadd [#allocation3], 4294967264 }
  0x19   :  { %164 = dma.done.wait [#allocation6], 256  }
  0x1a   :  { %165 = vsyncadd [#allocation6], 4294967040  ;;  %v41_v0 = vlaneseq  ;;  %v38_v4 = vld [vmem:[#allocation2] sm:$0x3]  ;;  %v39_v7 = vld [vmem:[#allocation5] sm:$0xff]  ;;  %vm57_vm0 = vcmask 261120  }
  0x1b   :  { %v40_v10 = vld [vmem:[#allocation5 + $0x8] sm:$0xff]  ;;  %s172_s0 = smov [#allocation7]   ;;  %vm76_vm1 = vcmask 1041409   ;;  %vm79_vm2 = vcmask 254976  }
  0x1c   :  { %v42_v1 = vshrl.u32 %v41_v0, 7  ;;  %s87_s1 = sshll.u32 %s172_s0, 4  ;;  %s88_s1 = int_to_ptr.vmem [resolvable:$true] %s87_s1 }
  0x1d   :  { %s142_s21 = scalar_lea.vmem %s88_s1, 32  ;;  %p147_p11 = scmp.lt.s32.totalorder %s88_s1, %s88_s1 }
  0x1e   :  { %v43_v2 = vsub.s32 0, %v42_v1  ;;  %v50_v3 = vsub.s32 1, %v42_v1  ;;  %p143_p10 = scmp.ne.s32.totalorder %s88_s1, %s142_s21  ;;  %p148_p12 = scmp.lt.s32.totalorder %s142_s21, %s142_s21 }
  0x20   :  { %v44_v5 = vrot.slane %v38_v4, %v43_v2  ;;  %v51_v6 = vrot.slane %v38_v4, %v50_v3  ;;  %p149_p13 = por %p148_p12, %p147_p11 }
  0x22   :  { %46 = vbcast.lane.b32.xlu0 %v44_v5, 256  ;;  %p150_p0 = pnand %p149_p13, %p143_p10 }
  0x26   :  { %53 = vbcast.lane.b32.xlu0 %v51_v6, 256 }
  0x94   :  { %v47_v8 = vpop.permute.xlu0 %46 }
  0x95   :  { %v55_v9 = vmul.f32 %v47_v8, %v39_v7 }
  0x97   :  { %v58_v11 = vsel %vm57_vm0, %v55_v9, 0.0 }
  0x98   :  { %v59_v12 = vrot.slane %v58_v11, 4  ;;  %v54_v13 = vpop.permute.xlu0 %53 }
  0x99   :  { %v56_v14 = vmul.f32 %v54_v13, %v40_v10 }
  0x9a   :  { %v60_v15 = vadd.f32 %v59_v12, %v58_v11 }
  0x9b   :  { %v65_v16 = vsel %vm57_vm0, %v56_v14, 0.0 }
  0x9c   :  { %v61_v17 = vrot.slane %v60_v15, 2  ;;  %v66_v18 = vrot.slane %v65_v16, 4 }
  0x9e   :  { %v62_v19 = vadd.f32 %v61_v17, %v60_v15  ;;  %v67_v20 = vadd.f32 %v66_v18, %v65_v16 }
  0xa0   :  { %v68_v21 = vrot.slane %v67_v20, 2  ;;  %v63_v22 = vrot.slane %v62_v19, 1 }
  0xa2   :  { %v69_v23 = vadd.f32 %v68_v21, %v67_v20  ;;  %v64_v25 = vadd.f32 %v63_v22, %v62_v19 }
  0xa4   :  { %v70_v24 = vrot.slane %v69_v23, 1 }
  0xa6   :  { %v71_v26 = vadd.f32 %v70_v24, %v69_v23 }
  0xa8   :  { %v77_v27 = vsel %vm76_vm1, %v71_v26, %v64_v25 }
  0xa9   :  { %80 = vst.msk [vmem:[#allocation7] sm:$0x3] %vm79_vm2, %v77_v27 }
  0xaa   :  { %153 = shalt.err (!%p150_p0)
}
  0xab   :  { %90 = dma.vmem_to_hbm [thread:$0]  %s88_s1, 32, %s199_s2, [#allocation4]  }
  0xac   :  { %166 = dma.done.wait [#allocation4], 32  }
  0xad   :  { %167 = vsyncadd [#allocation4], 4294967264 }
  0xae   :  { %94 = vsyncpa [#allocation3], 1 }
  0xaf   :  { %95 = vsyncpa [#allocation6], 1 }
  0xb0   :  { %96 = vsyncpa [#allocation4], 1 }

</bundles_post_ra>
